<compile_context>
chip_gen: v7x
topology: tpu7x:2x2x1
jax: 0.10.0
libtpu: 0.0.40
codegen_flags: <defaults>
</compile_context>

<pallas_src>
import functools
import math

import jax
import jax.numpy as jnp
from jax.experimental import pallas as pl
from jax.experimental.pallas import tpu as pltpu

VOXEL_SIZE = (0.2, 0.2, 4.0)
POINT_CLOUD_RANGE = (0.0, -40.0, -3.0, 70.4, 40.0, 1.0)
ALPHA = 0.5
MAX_NUM_POINTS = 5  # from calculate_max_values()
DISTANCE_MAX = math.sqrt(sum(v * v for v in VOXEL_SIZE))  # torch.norm(voxel_size)
DENSITY_MAX = float(MAX_NUM_POINTS)
BN_EPS = 1e-3
LANES = 128  # TPU vreg lane width


def _vfe_kernel(feat_ref, w_ref, shift_ref, out_ref, *, num_groups, chunk_w, cout):
    """Fused hot path: bf16 Linear (BN scale pre-folded, point slots packed
    4-per-128-lane group) -> max over point slots -> + BN shift -> ReLU.

    Shift+ReLU after the max is exact: the shift is per-channel (constant across
    points) and ReLU is monotone nondecreasing."""
    x = feat_ref[...].astype(jnp.bfloat16)                  # (tn, M*Cin) bf16 for the MXU

    # One 128-lane-wide dot per slot-group, folded into a running max:
    # the live intermediate is only (tn, 128) f32.
    acc = jnp.dot(x, w_ref[:, 0:LANES], preferred_element_type=jnp.float32)
    for g in range(1, num_groups):
        acc = jnp.maximum(
            acc,
            jnp.dot(x, w_ref[:, g * LANES:(g + 1) * LANES],
                    preferred_element_type=jnp.float32))

    # Cross-chunk max (slots packed at lane offsets chunk_w apart) via XLU rolls
    # (free slot relative to the VPU/MXU work).
    sh = LANES // 2
    while sh >= chunk_w:
        acc = jnp.maximum(acc, pltpu.roll(acc, shift=sh, axis=1))
        sh //= 2

    # folded BN shift + ReLU; narrow (tn, Cout) store (minimal HBM writeback)
    out_ref[...] = jnp.maximum(acc[:, :cout] + shift_ref[...], 0.0).astype(out_ref.dtype)


def _pack_weight(w_eff, m, cin, cout):
    """Pack per-point-slot copies of the (Cin, Cout) weight so that up to
    128//chunk_w slots share one 128-lane output group (block structure over the
    M point slots).  Unused trailing chunks duplicate an existing slot so the
    in-kernel max is unchanged (idempotent)."""
    if cout <= 32:
        chunk_w = 32
    elif cout <= 64:
        chunk_w = 64
    else:
        chunk_w = LANES
    assert cout <= LANES, "Cout > 128 needs multi-tile output handling"
    slots_per_group = LANES // chunk_w
    num_groups = -(-m // slots_per_group)

    w_big = jnp.zeros((m * cin, num_groups * LANES), jnp.float32)
    for s in range(num_groups * slots_per_group):
        src = s if s < m else (s % m)   # duplicate -> max-idempotent padding
        g, c = divmod(s, slots_per_group)
        col0 = g * LANES + c * chunk_w
        w_big = w_big.at[src * cin:(src + 1) * cin, col0:col0 + cout].set(w_eff)
    return w_big.astype(jnp.bfloat16), num_groups, chunk_w


def init_params(cin, cout, kw, kg, kb):
    """Deterministic synthetic parameters (VFELayer: Linear(no bias) + BN1d)."""
    w = jax.random.normal(kw, (cin, cout), jnp.float32) * 0.1        # (Cin, Cout)
    gamma = 1.0 + 0.1 * jax.random.normal(kg, (cout,), jnp.float32)
    beta = 0.1 * jax.random.normal(kb, (cout,), jnp.float32)
    running_mean = jnp.zeros((cout,), jnp.float32)
    running_var = jnp.ones((cout,), jnp.float32)
    # TODO(synk): BatchNorm reproduced in eval mode (running stats); training-mode
    # batch statistics over (N*M) are not computed.
    bn_scale = gamma / jnp.sqrt(running_var + BN_EPS)
    bn_shift = beta - running_mean * bn_scale
    return {"w": w, "bn_scale": bn_scale, "bn_shift": bn_shift}


def self_adaptive_voxelization_forward(features, num_points, coors, params, *,
                                       tile_n=2048, assume_zero_padded=True):
    """features: (N, M, Cin) f32, num_points: (N,) int, coors: (N, 4) int (b, z, y, x)."""
    n, m, cin = features.shape
    cout = params["w"].shape[1]

    # ---- glue (plain JAX): per-voxel density via unique voxel coordinates ----
    nz = int(round((POINT_CLOUD_RANGE[5] - POINT_CLOUD_RANGE[2]) / VOXEL_SIZE[2]))
    ny = int(round((POINT_CLOUD_RANGE[4] - POINT_CLOUD_RANGE[1]) / VOXEL_SIZE[1]))
    nx = int(round((POINT_CLOUD_RANGE[3] - POINT_CLOUD_RANGE[0]) / VOXEL_SIZE[0]))
    key = ((coors[:, 0] * nz + coors[:, 1]) * ny + coors[:, 2]) * nx + coors[:, 3]
    _, inverse, counts = jnp.unique(key, size=n, fill_value=-1,
                                    return_inverse=True, return_counts=True)
    inverse = inverse.reshape(-1)
    density = counts[inverse].astype(jnp.float32)

    # ---- glue (plain JAX): calculate_adaptive_voxel_size (O(N*3), lane-sparse) ----
    vsize = jnp.asarray(VOXEL_SIZE, jnp.float32)
    pts_mean = jnp.mean(features[:, :, :3], axis=1)        # mean over all M slots, as reference
    vcenters = coors[:, 1:].astype(jnp.float32) * vsize
    dist = jnp.sqrt(jnp.sum((pts_mean - vcenters) ** 2, axis=1))
    nd = dist / DISTANCE_MAX
    ndens = density / DENSITY_MAX
    scaling = jnp.clip(
        jnp.log1p(ALPHA * jnp.sqrt(nd + 1e-6) + (1.0 - ALPHA) / jnp.sqrt(ndens + 1e-6)),
        0.5, 1.5)
    adaptive_voxel_size = vsize[None, :] * scaling[:, None]

    # ---- padding mask: the hard voxelizer zero-fills padded point slots, which
    # is exactly what `voxel_feats *= mask` (mask-before-linear) produces, so the
    # in-kernel mask is dropped.  Re-apply in plain JAX only if not guaranteed.
    if not assume_zero_padded:
        slot = jnp.arange(m, dtype=jnp.int32)[None, :, None]
        features = jnp.where(slot < num_points.astype(jnp.int32)[:, None, None],
                             features, 0.0)

    # ---- fold BN scale into W; pack point slots 4-per-128-lane group; bf16 ----
    w_eff = params["w"] * params["bn_scale"].reshape(1, cout)          # (Cin, Cout)
    w_big, num_groups, chunk_w = _pack_weight(w_eff, m, cin, cout)     # (M*Cin, G*128) bf16
    shift = params["bn_shift"].reshape(1, cout).astype(jnp.float32)

    # ---- lane-contiguous feature layout + row padding; >= 2 grid steps (v7x) ----
    feat2d = features.reshape(n, m * cin)
    tn = min(tile_n, -(-n // 2))              # at least 2 grid steps when possible
    tn = max(8, ((tn + 7) // 8) * 8)          # sublane-aligned row tile
    n_pad = -(-n // tn) * tn
    if n_pad != n:
        feat2d = jnp.pad(feat2d, ((0, n_pad - n), (0, 0)))
    grid_steps = n_pad // tn

    kernel = functools.partial(_vfe_kernel, num_groups=num_groups,
                               chunk_w=chunk_w, cout=cout)
    point_feats = pl.pallas_call(
        kernel,
        out_shape=jax.ShapeDtypeStruct((n_pad, cout), jnp.float32),
        grid=(grid_steps,),
        in_specs=[
            pl.BlockSpec((tn, m * cin), lambda i: (i, 0)),               # features (N, M*Cin) f32
            pl.BlockSpec((m * cin, num_groups * LANES), lambda i: (0, 0)),  # packed bf16 weight
            pl.BlockSpec((1, cout), lambda i: (0, 0)),                   # folded BN shift
        ],
        out_specs=pl.BlockSpec((tn, cout), lambda i: (i, 0)),
        compiler_params=pltpu.CompilerParams(
            dimension_semantics=("parallel",),
            vmem_limit_bytes=32 * 1024 * 1024),
    )(feat2d, w_big, shift)[:n]

    # ---- glue (plain JAX): DynamicScatter(mode='max') — data-dependent scatter-max
    # over unique voxel coordinates.  Rows >= num_voxels are padding (zeroed).
    voxel_feats = jax.ops.segment_max(point_feats, inverse, num_segments=n)
    valid = counts > 0
    voxel_feats = jnp.where(valid[:, None], voxel_feats, 0.0)
    num_voxels = jnp.sum(valid)

    # adaptive_voxel_size only updates the scatter's stored voxel_size attribute in
    # the reference module (no effect on its output); returned here as auxiliary.
    return voxel_feats, num_voxels, adaptive_voxel_size


if __name__ == "__main__":
    N, M, CIN, COUT = 64, 8, 4, 32
    root = jax.random.PRNGKey(0)
    kf, kn, kbi, kyc, kxc, kw, kg, kb = jax.random.split(root, 8)

    features = jax.random.normal(kf, (N, M, CIN), jnp.float32)
    num_points = jax.random.randint(kn, (N,), 1, M + 1, dtype=jnp.int32)
    # zero out padded point slots, mimicking hard voxelizer output
    slot = jnp.arange(M, dtype=jnp.int32)[None, :, None]
    features = features * (slot < num_points[:, None, None]).astype(jnp.float32)

    batch_idx = jax.random.randint(kbi, (N,), 0, 2, dtype=jnp.int32)
    z_idx = jnp.zeros((N,), jnp.int32)                               # nz == 1
    y_idx = jax.random.randint(kyc, (N,), 0, 400, dtype=jnp.int32)
    x_idx = jax.random.randint(kxc, (N,), 0, 352, dtype=jnp.int32)
    coors = jnp.stack([batch_idx, z_idx, y_idx, x_idx], axis=1)

    params = init_params(CIN, COUT, kw, kg, kb)

    voxel_feats, num_voxels, adaptive_vs = self_adaptive_voxelization_forward(
        features, num_points, coors, params)
    jax.block_until_ready((voxel_feats, num_voxels, adaptive_vs))
    assert voxel_feats.shape == (N, COUT)
    assert adaptive_vs.shape == (N, 3)
    print("KERNEL_OK")
</pallas_src>

<mosaic_0001>
module attributes {stable_mosaic.version = 11 : i64} {
  func.func @_vfe_kernel(%arg0: i32, %arg1: memref<32x32xf32, #tpu.memory_space<vmem>>, %arg2: memref<32x256xbf16, #tpu.memory_space<vmem>>, %arg3: memref<1x32xf32, #tpu.memory_space<vmem>>, %arg4: memref<32x32xf32, #tpu.memory_space<vmem>>) attributes {dimension_semantics = [#tpu.dimension_semantics<parallel>], iteration_bounds = array<i64: 2>, scalar_prefetch = 0 : i64, scratch_operands = 0 : i64, tpu.core_type = #tpu.core_type<tc>, window_params = [{transform_indices = @transform_0, window_bounds = array<i64: 32, 32>}, {pipeline_mode = #tpu.pipeline_mode<synchronous>, transform_indices = @transform_1, window_bounds = array<i64: 32, 256>}, {pipeline_mode = #tpu.pipeline_mode<synchronous>, transform_indices = @transform_2, window_bounds = array<i64: 1, 32>}, {transform_indices = @transform_3, window_bounds = array<i64: 32, 32>}]} {
    %c0 = arith.constant 0 : index
    %c0_0 = arith.constant 0 : index
    %0 = vector.load %arg1[%c0, %c0_0] : memref<32x32xf32, #tpu.memory_space<vmem>>, vector<32x32xf32>
    %1 = arith.truncf %0 : vector<32x32xf32> to vector<32x32xbf16>
    %c0_1 = arith.constant 0 : index
    %c0_2 = arith.constant 0 : index
    %2 = vector.load %arg2[%c0_1, %c0_2] : memref<32x256xbf16, #tpu.memory_space<vmem>>, vector<32x128xbf16>
    %cst = arith.constant dense<0.000000e+00> : vector<32x128xf32>
    %3 = tpu.matmul %1, %2, %cst {dimension_numbers = #tpu.dot_dimension_numbers<[1], [0], [0], [1], [0, 0, 1, 1], [], []>} : vector<32x32xbf16>, vector<32x128xbf16>, vector<32x128xf32> -> vector<32x128xf32>
    %c0_3 = arith.constant 0 : index
    %c128 = arith.constant 128 : index
    %4 = vector.load %arg2[%c0_3, %c128] : memref<32x256xbf16, #tpu.memory_space<vmem>>, vector<32x128xbf16>
    %cst_4 = arith.constant dense<0.000000e+00> : vector<32x128xf32>
    %5 = tpu.matmul %1, %4, %cst_4 {dimension_numbers = #tpu.dot_dimension_numbers<[1], [0], [0], [1], [0, 0, 1, 1], [], []>} : vector<32x32xbf16>, vector<32x128xbf16>, vector<32x128xf32> -> vector<32x128xf32>
    %6 = arith.maximumf %3, %5 : vector<32x128xf32>
    %c64_i32 = arith.constant 64 : i32
    %7 = tpu.dynamic_rotate %6 by %c64_i32 dim 1 : vector<32x128xf32>, i32 -> vector<32x128xf32>
    %8 = arith.maximumf %6, %7 : vector<32x128xf32>
    %c32_i32 = arith.constant 32 : i32
    %9 = tpu.dynamic_rotate %8 by %c32_i32 dim 1 : vector<32x128xf32>, i32 -> vector<32x128xf32>
    %10 = arith.maximumf %8, %9 : vector<32x128xf32>
    %11 = vector.extract_strided_slice %10 {offsets = [0, 0], sizes = [32, 32], strides = [1, 1]} : vector<32x128xf32> to vector<32x32xf32>
    %c0_5 = arith.constant 0 : index
    %c0_6 = arith.constant 0 : index
    %12 = vector.load %arg3[%c0_5, %c0_6] : memref<1x32xf32, #tpu.memory_space<vmem>>, vector<1x32xf32>
    %13 = vector.broadcast %12 : vector<1x32xf32> to vector<32x32xf32>
    %14 = arith.addf %11, %13 : vector<32x32xf32>
    %cst_7 = arith.constant 0.000000e+00 : f32
    %15 = vector.broadcast %cst_7 : f32 to vector<32x32xf32>
    %16 = arith.maximumf %14, %15 : vector<32x32xf32>
    %c0_8 = arith.constant 0 : index
    %c0_9 = arith.constant 0 : index
    %17 = vector.load %arg4[%c0_8, %c0_9] : memref<32x32xf32, #tpu.memory_space<vmem>>, vector<32x32xf32>
    tpu.vector_store %arg4[%c0_8, %c0_9], %16 {strides = array<i32>} : memref<32x32xf32, #tpu.memory_space<vmem>>, vector<32x32xf32>,
    return
  }
  func.func @transform_0(%arg0: i32) -> (i32, i32) {
    %c0_i32 = arith.constant 0 : i32
    %c0_i32_0 = arith.constant 0 : i32
    return %arg0, %c0_i32 : i32, i32
  }
  func.func @transform_1(%arg0: i32) -> (i32, i32) {
    %c0_i32 = arith.constant 0 : i32
    %c0_i32_0 = arith.constant 0 : i32
    %c0_i32_1 = arith.constant 0 : i32
    return %c0_i32, %c0_i32_0 : i32, i32
  }
  func.func @transform_2(%arg0: i32) -> (i32, i32) {
    %c0_i32 = arith.constant 0 : i32
    %c0_i32_0 = arith.constant 0 : i32
    %c0_i32_1 = arith.constant 0 : i32
    return %c0_i32, %c0_i32_0 : i32, i32
  }
  func.func @transform_3(%arg0: i32) -> (i32, i32) {
    %c0_i32 = arith.constant 0 : i32
    %c0_i32_0 = arith.constant 0 : i32
    return %arg0, %c0_i32 : i32, i32
  }
}

</mosaic_0001>

<bundles_post_ra>
// kernel: tpu_custom_call.1
= control target key start
LH: loop header
LB: loop body
LE: loop exit
PB: predicated region body
PF: predicated region fallthrough
CT: control target
= control target key end

     0   :  { %s509_s12 = smov 0   ;;  %s556_s0 = inlined_call_operand.vmem [shape: f32[64,32], index: 0, kind: input, shape index: {}]   ;;  %s557_s1 = inlined_call_operand.vmem [shape: bf16[32,256], index: 1, kind: input, shape index: {}]   ;;  %s558_s2 = inlined_call_operand.vmem [shape: f32[1,32], index: 2, kind: input, shape index: {}]   ;;  %s559_s3 = inlined_call_operand.vmem [shape: f32[64,32], index: 3, kind: output, shape index: {}]  }
   0x1 LB: > { %s421_s13 = sadd.s32 4294967295, %s485_s12   ;;  %p425_p0 = scmp.ge.s32.totalorder %s485_s12, 1  ;;  %s485_s12 = sphi %s509_s12, %s13_s12  }
   0x2   : > { %p138_p1 = scmp.lt.s32.totalorder %s485_s12, 3 }
   0x4   : > { %p139_p2 = pnand %p425_p0, %p138_p1 }
   0x5   : > { %v475_v0 = vld [vmem:[%s557_s1] ss:$8 sps:$4 sm:$0xff] (!%p139_p2)   ;;  %v476_v1 = vld [vmem:[%s557_s1 + $0x4] ss:$8 sps:$4 sm:$0xff] (!%p139_p2)   ;;  %v477_v2 = vld [vmem:[%s557_s1 + $0x10] ss:$8 sps:$4 sm:$0xff] (!%p139_p2)  }
   0x6   : > { %142 = sbr.rel (%p139_p2) target bundleno = 482 (0x1e2), region = 32  ;;  %449 = vmatprep.subr.bf16.mxu0 (!%p139_p2), %v475_v0  ;;  %457 = vmatprep.subr.bf16.mxu1 (!%p139_p2), %v476_v1  ;;  %v478_v3 = vld [vmem:[%s557_s1 + $0x14] ss:$8 sps:$4 sm:$0xff] (!%p139_p2)   ;;  %s426_s22 = sshll.u32 (!%p139_p2), %s421_s13, 2  ;;  %vm197_vm0 = vcmask (!%p139_p2), 261120  }
   0x7   : > { %450 = vmatpush3.bf16.msra.mxu0 (!%p139_p2), %v475_v0  ;;  %458 = vmatpush3.bf16.msra.mxu1 (!%p139_p2), %v476_v1  ;;  %p163_p3 = scmp.lt.s32.totalorder (!%p139_p2), %s426_s22, 7  ;;  %s487_s27 = smov (!%p139_p2), 64   ;;  %v438_v30 = vld [vmem:[%s558_s2] ss:$0 sm:$0xff] (!%p139_p2) }
   0x8   : > { %451 = vmatprep.subr.bf16.mxu0 (!%p139_p2), %v477_v2  ;;  %459 = vmatprep.subr.bf16.mxu1 (!%p139_p2), %v478_v3  ;;  %s488_s28 = smov (!%p139_p2), 32  }
   0xb   : > { %452 = vmatpush3.bf16.msra.mxu0 (!%p139_p2), %v477_v2  ;;  %460 = vmatpush3.bf16.msra.mxu1 (!%p139_p2), %v478_v3 }
   0xd   : > { %s561_s22 = smov (!%p163_p3, %s426_s22), 7 }
   0xe   : > { %s427_s23 = sshll.u32 %s561_s22, 3 }
   0xf   : > { %s166_s26 = scalar_lea.vmem %s556_s0, %s427_s23  ;;  %s172_s6 = scalar_lea.vmem %s559_s3, %s427_s23 }
  0x10   : > { %v175_v4 = vld [vmem:[%s166_s26] sm:$0xff]  ;;  %v176_v5 = vld [vmem:[%s166_s26 + $0x8] sm:$0xff]  ;;  %v177_v6 = vld [vmem:[%s166_s26 + $0x10] sm:$0xff] }
  0x11   : > { %v179_v7 = vpack.c.bf16 %v176_v5, %v175_v4  ;;  %v178_v8 = vld [vmem:[%s166_s26 + $0x18] sm:$0xff] }
  0x12   : > { %v180_v9 = vpack.c.bf16 %v178_v8, %v177_v6 }
  0x13   : > { %453 = vmatprep.mubr.msk.bf16.mxu0 %vm197_vm0, %v179_v7  ;;  %461 = vmatprep.mubr.msk.bf16.mxu1 %vm197_vm0, %v179_v7 }
  0x14   : > { %454 = vmatmul.mubr.msk.bf16.vlgmr.msra.gmra.mrb[0].mxu0 %vm197_vm0, %v180_v9  ;;  %462 = vmatmul.mubr.msk.bf16.vlgmr.msra.gmra.mrb[0].mxu1 %vm197_vm0, %v180_v9 }
  0xe7   : > { %v455_v10 = vpop.f32.mrb[0].mxu0  ;;  %v463_v11 = vpop.f32.mrb[0].mxu1 }
  0xe8   : > { %v320_v12 = vmax.f32 %v455_v10, %v463_v11  ;;  %v238_v13 = vpop.f32.mrb[1].mxu0  ;;  %v303_v14 = vpop.f32.mrb[1].mxu1 }
  0xe9   : > { %v318_v15 = vmax.f32 %v238_v13, %v303_v14  ;;  %v456_v16 = vpop.f32.mrb[2].mxu0  ;;  %v464_v17 = vpop.f32.mrb[2].mxu1 }
  0xea   : > { %v321_v18 = vmax.f32 %v456_v16, %v464_v17  ;;  %v306_v19 = vpop.f32.mrb[3].mxu1  ;;  %326 = vrot.lane.b32.xlu1 %v320_v12, %s487_s27  ;;  %v241_v20 = vpop.f32.mrb[3].mxu0 }
  0xeb   : > { %v319_v21 = vmax.f32 %v241_v20, %v306_v19  ;;  %322 = vrot.lane.b32.xlu0 %v318_v15, %s487_s27 }
  0xee   : > { %328 = vrot.lane.b32.xlu1 %v321_v18, %s487_s27 }
  0xef   : > { %324 = vrot.lane.b32.xlu0 %v319_v21, %s487_s27 }
 0x15c   : > { %v327_v22 = vpop.permute.xlu1 %326 }
 0x15d   : > { %v323_v23 = vpop.permute.xlu0 %322  ;;  %v332_v26 = vmax.f32 %v320_v12, %v327_v22 }
 0x15e   : > { %v330_v24 = vmax.f32 %v318_v15, %v323_v23 }
 0x160   : > { %334 = vrot.lane.b32.xlu0 %v330_v24, %s488_s28  ;;  %v329_v28 = vpop.permute.xlu1 %328 }
 0x161   : > { %v325_v25 = vpop.permute.xlu0 %324  ;;  %v333_v29 = vmax.f32 %v321_v18, %v329_v28 }
 0x162   : > { %v331_v27 = vmax.f32 %v319_v21, %v325_v25 }
 0x164   : > { %338 = vrot.lane.b32.xlu0 %v332_v26, %s488_s28  ;;  %336 = vrot.lane.b32.xlu1 %v331_v27, %s488_s28 }
 0x168   : > { %340 = vrot.lane.b32.xlu1 %v333_v29, %s488_s28 }
 0x1d2   : > { %v335_v31 = vpop.permute.xlu0 %334 }
 0x1d3   : > { %v342_v32 = vmax.f32 %v330_v24, %v335_v31 }
 0x1d5   : > { %v353_v33 = vadd.f32 %v438_v30, %v342_v32 }
 0x1d6   : > { %v337_v34 = vpop.permute.xlu1 %336  ;;  %v339_v35 = vpop.permute.xlu0 %338 }
 0x1d7   : > { %v357_v36 = vmax.f32 %v353_v33, 0.0  ;;  %v343_v37 = vmax.f32 %v331_v27, %v337_v34  ;;  %v344_v38 = vmax.f32 %v332_v26, %v339_v35 }
 0x1d9   : > { %361 = vst.msk [vmem:[%s172_s6] sm:$0xff] %vm197_vm0, %v357_v36  ;;  %v354_v39 = vadd.f32 %v438_v30, %v343_v37  ;;  %v355_v40 = vadd.f32 %v438_v30, %v344_v38 }
 0x1da   : > { %v341_v41 = vpop.permute.xlu1 %340 }
 0x1db   : > { %v358_v42 = vmax.f32 %v354_v39, 0.0  ;;  %v359_v43 = vmax.f32 %v355_v40, 0.0  ;;  %v345_v44 = vmax.f32 %v333_v29, %v341_v41 }
 0x1dd   : > { %362 = vst.msk [vmem:[%s172_s6 + $0x8] sm:$0xff] %vm197_vm0, %v358_v42  ;;  %v356_v45 = vadd.f32 %v438_v30, %v345_v44  ;;  %363 = vst.msk [vmem:[%s172_s6 + $0x10] sm:$0xff] %vm197_vm0, %v359_v43 }
 0x1df   : > { %v360_v46 = vmax.f32 %v356_v45, 0.0 }
 0x1e1   : > { %364 = vst.msk [vmem:[%s172_s6 + $0x18] sm:$0xff] %vm197_vm0, %v360_v46 }
 0x1e2 PF: > { %s13_s12 = sadd.s32 1, %s485_s12  }
 0x1e3   : > { %p10_p4 = scmp.ge.s32.totalorder %s13_s12, 4  }
 0x1e5   :  { %12 = sbr.rel (!%p10_p4) target bundleno = 1 (0x1), region = 62 }

</bundles_post_ra>
